<compile_context>
chip_gen: v5e
topology: v5e:2x2
jax: 0.10.0
libtpu: 0.0.40
codegen_flags: <defaults>
</compile_context>

<pallas_src>
import math

import jax
import jax.numpy as jnp
from jax.experimental import pallas as pl
from jax.experimental.pallas import tpu as pltpu


def _logit_head_kernel(scale_ref, x_ref, w_ref, b_ref, o_ref):
    # scale_ref: (1,) f32 in SMEM -- already exp(logit_scale) (host-side exp).
    # x_ref:     (tB, D)  input dtype (bf16/f32) in VMEM
    # w_ref:     (D, tC)  input dtype in VMEM
    # b_ref:     (1, tC)  f32 in VMEM
    # o_ref:     (tB, tC) f32 in VMEM
    x = x_ref[...].astype(jnp.float32)

    # F.normalize(x, dim=1): x / max(||x||, 1e-12)  ==  x * rsqrt(max(||x||^2, 1e-24))
    # (normalization is recomputed per C-tile; it is O(tB*D) VPU work, cheap vs the matmul,
    #  and keeps both grid axes safely "parallel" for megacore sharding)
    sq = jnp.sum(x * x, axis=1, keepdims=True)
    inv = jax.lax.rsqrt(jnp.maximum(sq, 1e-24))
    x_n = (x * inv).astype(w_ref.dtype)

    # Linear head on the MXU, f32 accumulation.
    y = jnp.dot(x_n, w_ref[...], preferred_element_type=jnp.float32)

    # Bias + logit-scale (scale already exponentiated on host).
    o_ref[...] = ((y + b_ref[...]) * scale_ref[0]).astype(o_ref.dtype)


def _round_up(x, m):
    return (x + m - 1) // m * m


def logit_head(x, w, b, logit_scale, *, block_b=256, block_c=512,
               out_dtype=jnp.float32):
    """x: [B, D], w: [D, C], b: [C], logit_scale: python float or scalar.

    x / w may be f32 or bf16 (bf16 recommended: halves HBM bytes, doubles MXU rate);
    accumulation and output are f32.
    """
    B, D = x.shape
    Dw, C = w.shape
    assert D == Dw and b.shape == (C,)
    in_dtype = x.dtype
    w = w.astype(in_dtype)

    # Tile sizes: sublane-aligned B tile, lane-dense (multiple-of-128) C tile.
    # NOTE: for very large D (K-slab per C-tile approaching the scoped-VMEM budget,
    # esp. v7x's 64 MiB physical VMEM), shrink block_c or add a K grid axis with an
    # f32 accumulator; full-D K is kept here since typical head dims fit easily.
    tB = min(block_b, _round_up(B, 8))
    tC = min(block_c, _round_up(C, 128))
    D_pad = _round_up(D, 128)
    B_pad = _round_up(B, tB)
    C_pad = _round_up(C, tC)

    # Zero-pad (zeros do not perturb the row norms or the matmul); slice off at the end.
    xp = jnp.pad(x, ((0, B_pad - B), (0, D_pad - D)))
    wp = jnp.pad(w, ((0, D_pad - D), (0, C_pad - C)))
    bp = jnp.pad(b.astype(jnp.float32).reshape(1, C), ((0, 0), (0, C_pad - C)))

    # exp() folded on the host side: one tiny scalar op per call, not per grid step.
    scale = jnp.exp(jnp.asarray(logit_scale, dtype=jnp.float32)).reshape(1)

    grid = (B_pad // tB, C_pad // tC)

    out = pl.pallas_call(
        _logit_head_kernel,
        out_shape=jax.ShapeDtypeStruct((B_pad, C_pad), out_dtype),
        grid=grid,
        in_specs=[
            pl.BlockSpec(memory_space=pltpu.SMEM),               # exp(logit_scale)
            pl.BlockSpec((tB, D_pad), lambda i, j: (i, 0)),       # x    (B tile, full D)
            pl.BlockSpec((D_pad, tC), lambda i, j: (0, j)),       # W    (full D, C tile)
            pl.BlockSpec((1, tC), lambda i, j: (0, j)),           # bias (C tile)
        ],
        out_specs=pl.BlockSpec((tB, tC), lambda i, j: (i, j)),
        compiler_params=pltpu.CompilerParams(
            dimension_semantics=("parallel", "parallel")),
    )(scale, xp, wp, bp)

    return out[:B, :C]


def logit_head_ref(x, w, b, logit_scale):
    x = x.astype(jnp.float32)
    w = w.astype(jnp.float32)
    norm = jnp.sqrt(jnp.sum(x * x, axis=1, keepdims=True))
    x_n = x / jnp.maximum(norm, 1e-12)
    return (x_n @ w + b.astype(jnp.float32)[None, :]) * jnp.exp(jnp.float32(logit_scale))


if __name__ == "__main__":
    # Small shapes consistent with the module: batch=8, in_features=32, classes=16.
    B, D, C = 8, 32, 16
    key = jax.random.PRNGKey(0)
    kx, kw, kb = jax.random.split(key, 3)

    x = jax.random.normal(kx, (B, D), dtype=jnp.float32)

    # Deterministic nn.Linear-style init bounds.
    bound = 1.0 / math.sqrt(D)
    w = jax.random.uniform(kw, (D, C), minval=-bound, maxval=bound, dtype=jnp.float32)
    b = jax.random.uniform(kb, (C,), minval=-bound, maxval=bound, dtype=jnp.float32)

    logit_scale = float(math.log(1.0 / 0.07))

    # f32 path (tight tolerance vs reference).
    out_f32 = logit_head(x, w, b, logit_scale)
    jax.block_until_ready(out_f32)
    ref_f32 = logit_head_ref(x, w, b, logit_scale)
    assert out_f32.shape == (B, C)
    assert jnp.allclose(out_f32, ref_f32, atol=1e-4, rtol=1e-4), "f32 mismatch vs reference"

    # bf16 path (production-recommended: halves HBM traffic, doubles MXU rate; f32 accum).
    x_bf = x.astype(jnp.bfloat16)
    w_bf = w.astype(jnp.bfloat16)
    out_bf = logit_head(x_bf, w_bf, b, logit_scale)
    jax.block_until_ready(out_bf)
    ref_bf = logit_head_ref(x_bf, w_bf, b, logit_scale)
    assert out_bf.shape == (B, C)
    assert jnp.allclose(out_bf, ref_bf, atol=3e-2, rtol=3e-2), "bf16 mismatch vs reference"

    print("KERNEL_OK")
</pallas_src>

<mosaic_0001>
module attributes {stable_mosaic.version = 11 : i64} {
  func.func @_logit_head_kernel(%arg0: i32, %arg1: i32, %arg2: memref<1xf32, #tpu.memory_space<smem>>, %arg3: memref<8x128xf32, #tpu.memory_space<vmem>>, %arg4: memref<128x128xf32, #tpu.memory_space<vmem>>, %arg5: memref<1x128xf32, #tpu.memory_space<vmem>>, %arg6: memref<8x128xf32, #tpu.memory_space<vmem>>) attributes {dimension_semantics = [#tpu.dimension_semantics<parallel>, #tpu.dimension_semantics<parallel>], iteration_bounds = array<i64: 1, 1>, scalar_prefetch = 0 : i64, scratch_operands = 0 : i64, tpu.core_type = #tpu.core_type<tc>, window_params = [{transform_indices = @transform_0, window_bounds = array<i64: 1>}, {transform_indices = @transform_1, window_bounds = array<i64: 8, 128>}, {transform_indices = @transform_2, window_bounds = array<i64: 128, 128>}, {transform_indices = @transform_3, window_bounds = array<i64: 1, 128>}, {transform_indices = @transform_4, window_bounds = array<i64: 8, 128>}]} {
    %c0 = arith.constant 0 : index
    %c0_0 = arith.constant 0 : index
    %0 = vector.load %arg3[%c0, %c0_0] : memref<8x128xf32, #tpu.memory_space<vmem>>, vector<8x128xf32>
    %1 = arith.mulf %0, %0 : vector<8x128xf32>
    %cst = arith.constant dense<0.000000e+00> : vector<8xf32>
    %2 = vector.multi_reduction <add>, %1, %cst [1] : vector<8x128xf32> to vector<8xf32>
    %3 = vector.shape_cast %2 : vector<8xf32> to vector<8x1xf32>
    %cst_1 = arith.constant 1.000000e-24 : f32
    %4 = vector.broadcast %cst_1 : f32 to vector<8x1xf32>
    %5 = arith.maximumf %3, %4 : vector<8x1xf32>
    %6 = math.rsqrt %5 : vector<8x1xf32>
    %7 = vector.broadcast %6 : vector<8x1xf32> to vector<8x128xf32>
    %8 = arith.mulf %0, %7 : vector<8x128xf32>
    %c0_2 = arith.constant 0 : index
    %c0_3 = arith.constant 0 : index
    %9 = vector.load %arg4[%c0_2, %c0_3] : memref<128x128xf32, #tpu.memory_space<vmem>>, vector<128x128xf32>
    %cst_4 = arith.constant dense<0.000000e+00> : vector<8x128xf32>
    %10 = tpu.matmul %8, %9, %cst_4 {dimension_numbers = #tpu.dot_dimension_numbers<[1], [0], [0], [1], [0, 0, 1, 1], [], []>} : vector<8x128xf32>, vector<128x128xf32>, vector<8x128xf32> -> vector<8x128xf32>
    %c0_5 = arith.constant 0 : index
    %c0_6 = arith.constant 0 : index
    %11 = vector.load %arg5[%c0_5, %c0_6] : memref<1x128xf32, #tpu.memory_space<vmem>>, vector<1x128xf32>
    %12 = vector.broadcast %11 : vector<1x128xf32> to vector<8x128xf32>
    %13 = arith.addf %10, %12 : vector<8x128xf32>
    %c0_7 = arith.constant 0 : index
    %14 = memref.load %arg2[%c0_7] : memref<1xf32, #tpu.memory_space<smem>>
    %15 = vector.broadcast %14 : f32 to vector<8x128xf32>
    %16 = arith.mulf %13, %15 : vector<8x128xf32>
    %c0_8 = arith.constant 0 : index
    %c0_9 = arith.constant 0 : index
    %17 = vector.load %arg6[%c0_8, %c0_9] : memref<8x128xf32, #tpu.memory_space<vmem>>, vector<8x128xf32>
    tpu.vector_store %arg6[%c0_8, %c0_9], %16 {strides = array<i32>} : memref<8x128xf32, #tpu.memory_space<vmem>>, vector<8x128xf32>,
    return
  }
  func.func @transform_0(%arg0: i32, %arg1: i32) -> i32 {
    %c0_i32 = arith.constant 0 : i32
    %c0_i32_0 = arith.constant 0 : i32
    return %c0_i32 : i32
  }
  func.func @transform_1(%arg0: i32, %arg1: i32) -> (i32, i32) {
    %c0_i32 = arith.constant 0 : i32
    %c0_i32_0 = arith.constant 0 : i32
    return %arg0, %c0_i32 : i32, i32
  }
  func.func @transform_2(%arg0: i32, %arg1: i32) -> (i32, i32) {
    %c0_i32 = arith.constant 0 : i32
    %c0_i32_0 = arith.constant 0 : i32
    return %c0_i32, %arg1 : i32, i32
  }
  func.func @transform_3(%arg0: i32, %arg1: i32) -> (i32, i32) {
    %c0_i32 = arith.constant 0 : i32
    %c0_i32_0 = arith.constant 0 : i32
    return %c0_i32, %arg1 : i32, i32
  }
  func.func @transform_4(%arg0: i32, %arg1: i32) -> (i32, i32) {
    %c0_i32 = arith.constant 0 : i32
    return %arg0, %arg1 : i32, i32
  }
}

</mosaic_0001>

<bundles_post_ra>
// kernel: tpu_custom_call.1
= control target key start
LH: loop header
LB: loop body
LE: loop exit
PB: predicated region body
PF: predicated region fallthrough
CT: control target
= control target key end

     0   :  { %10 = vsyncpa [#allocation4], 0  ;;  %s258_s0 = inlined_call_operand.<no memory space> [shape: f32[1], index: 0, kind: input, shape index: {}]   ;;  %s259_s1 = inlined_call_operand.hbm [shape: f32[8,128], index: 1, kind: input, shape index: {}]   ;;  %s260_s2 = inlined_call_operand.hbm [shape: f32[128,128], index: 2, kind: input, shape index: {}]   ;;  %s261_s3 = inlined_call_operand.vmem [shape: f32[1,128], index: 3, kind: input, shape index: {}]   ;;  %s262_s4 = inlined_call_operand.hbm [shape: f32[8,128], index: 4, kind: output, shape index: {}]  }
   0x1   :  { %11 = vsyncpa [#allocation7], 0 }
   0x2   :  { %12 = vsyncpa [#allocation5], 0  ;;  %s20_s17 = sshll.u32 %s259_s1, 4  ;;  %s213_s18 = smov [#allocation3]   ;;  %s21_s17 = int_to_ptr.hbm [resolvable:$true] %s20_s17 }
   0x3   :  { %s22_s19 = sshll.u32 %s213_s18, 4  ;;  %s30_s22 = sshll.u32 %s260_s2, 4  ;;  %s23_s19 = int_to_ptr.vmem [resolvable:$true] %s22_s19  ;;  %s31_s22 = int_to_ptr.hbm [resolvable:$true] %s30_s22 }
   0x4   :  { %25 = dma.hbm_to_vmem [thread:$0]  %s21_s17, 128, %s23_s19, [#allocation4]  }
   0x5   :  { %s214_s23 = smov [#allocation6]   ;;  %s215_s25 = smov 128  }
   0x6   :  { %s32_s24 = sshll.u32 %s214_s23, 4  ;;  %s216_s26 = smov 8   ;;  %s33_s24 = int_to_ptr.vmem [resolvable:$true] %s32_s24 }
   0x7   :  { %38 = dma.hbm_to_vmem [thread:$0]  %s31_s22, 2048, %s33_s24, [#allocation7], %s215_s25, %s215_s25, %s216_s26  }
   0x8   :  { %207 = dma.done.wait [#allocation4], 128  }
   0x9   :  { %208 = vsyncadd [#allocation4], 4294967168 }
   0xa   :  { %209 = dma.done.wait [#allocation7], 2048  }
   0xb   :  { %210 = vsyncadd [#allocation7], 4294965248  ;;  %v49_v0 = vld [vmem:[#allocation3] sm:$0xff]  ;;  %v79_v2 = vld [vmem:[#allocation6 + $0x70] sm:$0xff]  ;;  %v106_v30 = vstv %s258_s0  ;;  %s217_s29 = smov [#allocation8]   ;;  %s116_s7 = sshll.u32 %s262_s4, 4  ;;  %s117_s7 = int_to_ptr.hbm [resolvable:$true] %s116_s7 }
   0xc   :  { %v80_v1 = vld [vmem:[#allocation6 + $0x78] sm:$0xff]  ;;  %v50_v3 = vmul.f32 %v49_v0, %v49_v0  ;;  %v78_v4 = vld [vmem:[#allocation6 + $0x68] sm:$0xff]  ;;  %v77_v5 = vld [vmem:[#allocation6 + $0x60] sm:$0xff]  ;;  %s114_s30 = sshll.u32 %s217_s29, 4  ;;  %s115_s30 = int_to_ptr.vmem [resolvable:$true] %s114_s30 }
   0xd   :  { %85 = vmatpush.msra.mxu0 %v80_v1  ;;  %v76_v6 = vld [vmem:[#allocation6 + $0x58] sm:$0xff]  ;;  %v75_v7 = vld [vmem:[#allocation6 + $0x50] sm:$0xff]  ;;  %v74_v8 = vld [vmem:[#allocation6 + $0x48] sm:$0xff] }
   0xe   :  { %51 = vadd.xlane.f32.xlu0 %v50_v3  ;;  %v73_v9 = vld [vmem:[#allocation6 + $0x40] sm:$0xff]  ;;  %v72_v10 = vld [vmem:[#allocation6 + $0x38] sm:$0xff]  ;;  %v71_v11 = vld [vmem:[#allocation6 + $0x30] sm:$0xff] }
   0xf   :  { %86 = vmatpush.msra.mxu0 %v79_v2  ;;  %v70_v12 = vld [vmem:[#allocation6 + $0x28] sm:$0xff]  ;;  %v69_v13 = vld [vmem:[#allocation6 + $0x20] sm:$0xff]  ;;  %v68_v14 = vld [vmem:[#allocation6 + $0x18] sm:$0xff] }
  0x10   :  { %v67_v15 = vld [vmem:[#allocation6 + $0x10] sm:$0xff]  ;;  %v66_v16 = vld [vmem:[#allocation6 + $0x8] sm:$0xff]  ;;  %v65_v17 = vld [vmem:[#allocation6] sm:$0xff] }
  0x11   :  { %87 = vmatpush.msra.mxu0 %v78_v4  ;;  %v132_v28 = vld [vmem:[%s261_s3] ss:$0 sm:$0xff] }
  0x13   :  { %88 = vmatpush.msra.mxu0 %v77_v5 }
  0x15   :  { %89 = vmatpush.msra.mxu0 %v76_v6 }
  0x17   :  { %90 = vmatpush.msra.mxu0 %v75_v7 }
  0x19   :  { %91 = vmatpush.msra.mxu0 %v74_v8 }
  0x1b   :  { %92 = vmatpush.msra.mxu0 %v73_v9 }
  0x1d   :  { %93 = vmatpush.msra.mxu0 %v72_v10 }
  0x1f   :  { %94 = vmatpush.msra.mxu0 %v71_v11 }
  0x21   :  { %95 = vmatpush.msra.mxu0 %v70_v12 }
  0x23   :  { %96 = vmatpush.msra.mxu0 %v69_v13 }
  0x25   :  { %97 = vmatpush.msra.mxu0 %v68_v14 }
  0x27   :  { %98 = vmatpush.msra.mxu0 %v67_v15 }
  0x29   :  { %99 = vmatpush.msra.mxu0 %v66_v16 }
  0x2b   :  { %100 = vmatpush.msra.mxu0 %v65_v17 }
  0x81   :  { %v52_v18 = vpop.xlane.xlu0 %51 }
  0x82   :  { %v53_v19 = vmax.f32 %v52_v18, 1e-24 }
  0x84   :  { %133 = vrsqrt.f32 %v53_v19  ;;  %vm60_vm1 = vweird.f32 %v53_v19 }
  0x8a   :  { %v134_v20 = vpop.eup %133 }
  0x8b   :  { %v55_v21 = vmul.f32 %v134_v20, %v53_v19  ;;  %vm61_vm0 = vweird.f32 %v134_v20 }
  0x8c   :  { %vm62_vm2 = vmor %vm60_vm1, %vm61_vm0 }
  0x8d   :  { %v56_v22 = vmul.f32 %v134_v20, %v55_v21 }
  0x8f   :  { %v57_v23 = vmul.f32 0.5, %v56_v22 }
  0x91   :  { %v58_v24 = vsub.f32 1.5, %v57_v23 }
  0x93   :  { %v59_v25 = vmul.f32 %v134_v20, %v58_v24 }
  0x95   :  { %v63_v26 = vsel %vm62_vm2, %v134_v20, %v59_v25 }
  0x96   :  { %v64_v27 = vmul.f32 %v63_v26, %v49_v0 }
  0x98   :  { %101 = vmatmul.f32.vlgmr.msra.gmra.mxu0 %v64_v27 }
 0x115   :  { %v102_v29 = vpop.f32.mrf.mxu0 }
 0x116   :  { %v103_v31 = vadd.f32 %v132_v28, %v102_v29 }
 0x118   :  { %v107_v32 = vmul.f32 %v106_v30, %v103_v31 }
 0x11a   :  { %108 = vst [vmem:[#allocation8] sm:$0xff] %v107_v32 }
 0x11b   :  { %119 = dma.vmem_to_hbm [thread:$0]  %s115_s30, 128, %s117_s7, [#allocation5]  }
 0x11c   :  { %211 = dma.done.wait [#allocation5], 128  }
 0x11d   :  { %212 = vsyncadd [#allocation5], 4294967168 }
 0x11e   :  { %124 = vsyncpa [#allocation4], 1 }
 0x11f   :  { %125 = vsyncpa [#allocation7], 1 }
 0x120   :  { %126 = vsyncpa [#allocation5], 1 }

</bundles_post_ra>
